<compile_context>
chip_gen: v7x
topology: tpu7x:2x2x1
jax: 0.10.0
libtpu: 0.0.40
codegen_flags: <defaults>
</compile_context>

<pallas_src>
import functools
import math

import jax
import jax.numpy as jnp
import numpy as np
from jax.experimental import pallas as pl
from jax.experimental.pallas import tpu as pltpu

_LANES = 128
_SUBLANES = 8


def _priorbox_kernel(tbl_ref, out_ref, *, clip):
    """Fused prior generation over the flat, 128-lane-aligned prior layout.

    tbl_ref : VMEM (3, R, 128) f32 static tables
        tbl[0] = ibase : (i + 0.5) at cx slots, 0 elsewhere
        tbl[1] = coef  : 1 / f_k_x at cx slots, 0 elsewhere
        tbl[2] = add   : (pre-clipped) cy / w / h constants at their slots, 0 elsewhere
    out_ref : VMEM (R, 128) f32 — fully dense, one unmasked vst per vreg.

    cx slots get clip((i+0.5) * (1/f_k_x)); all other slots pass the pre-clipped
    constants through (their cx product is exactly 0, so clip is a no-op there).
    """
    cx = tbl_ref[0] * tbl_ref[1]
    if clip:
        cx = jnp.clip(cx, 0.0, 1.0)
    out_ref[...] = cx + tbl_ref[2]


def _build_tables(config):
    """Static build of the flat (3, R, 128) table and the true prior count."""
    img = config["img_size"]
    ibase, coef, add = [], [], []
    for k, (H, W) in enumerate(config["layer_shape"]):
        f_k_x = img[0] / config["relative_feature_size"][k][0]
        f_k_y = img[1] / config["relative_feature_size"][k][1]
        s_k_x = config["min_size"][k][0] / img[0]
        s_k_y = config["min_size"][k][1] / img[1]
        s_p_x = config["max_size"][k][0] / img[0]
        s_p_y = config["max_size"][k][1] / img[1]
        wh = [(s_k_x, s_k_y), (s_p_x, s_p_y)]
        for r in config["layer_aspect_ratio"][k]:
            wh.append((s_k_x * math.sqrt(r), s_k_y / math.sqrt(r)))
            wh.append((s_k_x / math.sqrt(r), s_k_y * math.sqrt(r)))
        inv_fx = 1.0 / f_k_x
        for i in range(H):
            for j in range(W):
                cy = (j + 0.5) / f_k_y
                for (w, h) in wh:
                    ibase += [i + 0.5, 0.0, 0.0, 0.0]
                    coef += [inv_fx, 0.0, 0.0, 0.0]
                    add += [0.0, cy, w, h]

    n_floats = len(add)
    num_priors = n_floats // 4
    rows = max(_SUBLANES,
               math.ceil(math.ceil(n_floats / _LANES) / _SUBLANES) * _SUBLANES)
    padded = rows * _LANES

    def _pack(vals):
        a = np.zeros((padded,), np.float32)
        a[:n_floats] = np.asarray(vals, dtype=np.float32)
        return a.reshape(rows, _LANES)

    ibase_t = _pack(ibase)
    coef_t = _pack(coef)
    add_t = _pack(add)
    if config["clip"]:
        # Cast-then-clip in f32, exactly like the reference's post-hoc clamp.
        add_t = np.clip(add_t, 0.0, 1.0)

    tbl = np.stack([ibase_t, coef_t, add_t], axis=0)  # (3, rows, 128)
    return tbl, num_priors, rows


def priorbox_forward(config):
    """Pallas-backed equivalent of PriorBox.forward(). Returns (num_priors, 4) f32."""
    tbl, num_priors, rows = _build_tables(config)

    kernel = functools.partial(_priorbox_kernel, clip=bool(config["clip"]))
    out = pl.pallas_call(
        kernel,
        out_shape=jax.ShapeDtypeStruct((rows, _LANES), jnp.float32),
        in_specs=[pl.BlockSpec(memory_space=pltpu.MemorySpace.VMEM)],
        out_specs=pl.BlockSpec(memory_space=pltpu.MemorySpace.VMEM),
    )(jnp.asarray(tbl))

    # Flat prior order == reference row-major order; drop tail padding, view as boxes.
    return out.reshape(-1)[: 4 * num_priors].reshape(num_priors, 4)


def priorbox_reference(config):
    """Direct numpy port of the PyTorch loop, for verification."""
    box = []
    for k, _ in enumerate(config["layer_shape"]):
        f_k_x = config["img_size"][0] / config["relative_feature_size"][k][0]
        f_k_y = config["img_size"][1] / config["relative_feature_size"][k][1]
        for i in range(config["layer_shape"][k][0]):
            for j in range(config["layer_shape"][k][1]):
                cx = (i + 0.5) / f_k_x
                cy = (j + 0.5) / f_k_y
                s_k_x = config["min_size"][k][0] / config["img_size"][0]
                s_k_y = config["min_size"][k][1] / config["img_size"][1]
                box += [cx, cy, s_k_x, s_k_y]
                s_k_x_plus = config["max_size"][k][0] / config["img_size"][0]
                s_k_y_plus = config["max_size"][k][1] / config["img_size"][1]
                box += [cx, cy, s_k_x_plus, s_k_y_plus]
                for r in config["layer_aspect_ratio"][k]:
                    box += [cx, cy, s_k_x * math.sqrt(r), s_k_y / math.sqrt(r)]
                    box += [cx, cy, s_k_x / math.sqrt(r), s_k_y * math.sqrt(r)]
    boxes = np.asarray(box, dtype=np.float32).reshape(-1, 4)
    if config["clip"]:
        boxes = np.clip(boxes, 0.0, 1.0)
    return boxes


if __name__ == "__main__":
    # PriorBox.forward() takes no tensor inputs; the key is created per the harness
    # contract but is unused (the module is fully config-driven and deterministic).
    _ = jax.random.PRNGKey(0)

    config = {
        "img_size": (32, 32),
        "layer_shape": [(4, 4), (2, 2)],
        "layer_priorbox": [4, 6],              # read by __init__ only, unused in forward
        "relative_feature_size": [(8.0, 8.0), (16.0, 16.0)],
        "min_size": [(8.0, 8.0), (16.0, 16.0)],
        "max_size": [(16.0, 16.0), (24.0, 24.0)],
        "layer_aspect_ratio": [[2.0], [2.0, 3.0]],
        "clip": True,
    }

    boxes = jax.block_until_ready(priorbox_forward(config))

    ref = priorbox_reference(config)
    assert boxes.shape == ref.shape, (boxes.shape, ref.shape)
    np.testing.assert_allclose(np.asarray(boxes), ref, rtol=1e-6, atol=1e-6)

    print("KERNEL_OK")
</pallas_src>

<mosaic_0001>
module attributes {stable_mosaic.version = 11 : i64} {
  func.func @_priorbox_kernel(%arg0: memref<3x8x128xf32, #tpu.memory_space<vmem>>, %arg1: memref<8x128xf32, #tpu.memory_space<vmem>>) attributes {dimension_semantics = [], scalar_prefetch = 0 : i64, scratch_operands = 0 : i64, tpu.core_type = #tpu.core_type<tc>} {
    %c0 = arith.constant 0 : index
    %c0_0 = arith.constant 0 : index
    %c0_1 = arith.constant 0 : index
    %0 = vector.load %arg0[%c0, %c0_0, %c0_1] : memref<3x8x128xf32, #tpu.memory_space<vmem>>, vector<1x8x128xf32>
    %1 = vector.shape_cast %0 : vector<1x8x128xf32> to vector<8x128xf32>
    %c1 = arith.constant 1 : index
    %c0_2 = arith.constant 0 : index
    %c0_3 = arith.constant 0 : index
    %2 = vector.load %arg0[%c1, %c0_2, %c0_3] : memref<3x8x128xf32, #tpu.memory_space<vmem>>, vector<1x8x128xf32>
    %3 = vector.shape_cast %2 : vector<1x8x128xf32> to vector<8x128xf32>
    %4 = arith.mulf %1, %3 : vector<8x128xf32>
    %cst = arith.constant 0.000000e+00 : f32
    %cst_4 = arith.constant 1.000000e+00 : f32
    %5 = vector.broadcast %cst : f32 to vector<8x128xf32>
    %6 = arith.maximumf %5, %4 : vector<8x128xf32>
    %7 = vector.broadcast %cst_4 : f32 to vector<8x128xf32>
    %8 = arith.minimumf %7, %6 : vector<8x128xf32>
    %c2 = arith.constant 2 : index
    %c0_5 = arith.constant 0 : index
    %c0_6 = arith.constant 0 : index
    %9 = vector.load %arg0[%c2, %c0_5, %c0_6] : memref<3x8x128xf32, #tpu.memory_space<vmem>>, vector<1x8x128xf32>
    %10 = vector.shape_cast %9 : vector<1x8x128xf32> to vector<8x128xf32>
    %11 = arith.addf %8, %10 : vector<8x128xf32>
    %c0_7 = arith.constant 0 : index
    %c0_8 = arith.constant 0 : index
    %12 = vector.load %arg1[%c0_7, %c0_8] : memref<8x128xf32, #tpu.memory_space<vmem>>, vector<8x128xf32>
    tpu.vector_store %arg1[%c0_7, %c0_8], %11 {strides = array<i32>} : memref<8x128xf32, #tpu.memory_space<vmem>>, vector<8x128xf32>,
    return
  }
}

</mosaic_0001>

<bundles_post_ra>
// kernel: tpu_custom_call.1
= control target key start
LH: loop header
LB: loop body
LE: loop exit
PB: predicated region body
PF: predicated region fallthrough
CT: control target
= control target key end

     0   :  { %6 = vsyncpa [#allocation3], 0  ;;  %s138_s0 = inlined_call_operand.hbm [shape: f32[3,8,128], index: 0, kind: input, shape index: {}]   ;;  %s139_s1 = inlined_call_operand.hbm [shape: f32[8,128], index: 1, kind: output, shape index: {}]  }
   0x1   :  { %7 = vsyncpa [#allocation4], 0  ;;  %s100_s6 = smov [#allocation2]   ;;  %s52_s10 = scalar_lea.hbm %s138_s0, 384 }
   0x2   :  { %s13_s7 = sshll.u32 %s100_s6, 4  ;;  %p53_p0 = scmp.ne.s32.totalorder %s138_s0, %s52_s10  ;;  %s14_s7 = int_to_ptr.vmem [resolvable:$true] %s13_s7 }
   0x3   :  { %p56_p1 = scmp.lt.u32.totalorder %s52_s10, %s138_s0 }
   0x5   :  { %p58_p2 = pnand %p56_p1, %p53_p0 }
   0x7   :  { %61 = shalt.err (!%p58_p2)
}
   0x8   :  { %s62_s15 = scalar_lea.vmem %s14_s7, 384  ;;  %p67_p4 = scmp.lt.s32.totalorder %s14_s7, %s14_s7 }
   0x9   :  { %p63_p3 = scmp.ne.s32.totalorder %s14_s7, %s62_s15  ;;  %p68_p5 = scmp.lt.s32.totalorder %s62_s15, %s62_s15 }
   0xb   :  { %p69_p6 = por %p68_p5, %p67_p4 }
   0xd   :  { %p70_p7 = pnand %p69_p6, %p63_p3 }
   0xf   :  { %73 = shalt.err (!%p70_p7)
}
  0x10   :  { %s101_s16 = smov 128   ;;  %s102_s17 = smov 8  }
  0x11   :  { %19 = dma.hbm_to_vmem [thread:$0]  %s138_s0, 384, %s14_s7, [#allocation3], %s101_s16, %s101_s16, %s102_s17  }
  0x12   :  { %96 = dma.done.wait [#allocation3], 384  }
  0x13   :  { %97 = vsyncadd [#allocation3], 4294966912  ;;  %v23_v0 = vld [vmem:[#allocation2] sm:$0xff]  ;;  %v25_v1 = vld [vmem:[#allocation2 + $0x8] sm:$0xff]  ;;  %s103_s20 = smov [#allocation5]  }
  0x14   :  { %v26_v2 = vmul.f32 %v25_v1, %v23_v0  ;;  %v30_v4 = vld [vmem:[#allocation2 + $0x10] sm:$0xff]  ;;  %s39_s21 = sshll.u32 %s103_s20, 4  ;;  %s40_s21 = int_to_ptr.vmem [resolvable:$true] %s39_s21 }
  0x15   :  { %s74_s22 = scalar_lea.vmem %s40_s21, 128  ;;  %p79_p9 = scmp.lt.s32.totalorder %s40_s21, %s40_s21 }
  0x16   :  { %v27_v3 = vmax.f32 %v26_v2, 0.0  ;;  %p75_p8 = scmp.ne.s32.totalorder %s40_s21, %s74_s22  ;;  %p80_p10 = scmp.lt.s32.totalorder %s74_s22, %s74_s22 }
  0x18   :  { %v28_v5 = vmin.f32 %v27_v3, 1.0  ;;  %p81_p11 = por %p80_p10, %p79_p9 }
  0x1a   :  { %v31_v6 = vadd.f32 %v30_v4, %v28_v5  ;;  %p82_p12 = pnand %p81_p11, %p75_p8 }
  0x1c   :  { %32 = vst [vmem:[#allocation5] sm:$0xff] %v31_v6 }
  0x1d   :  { %85 = shalt.err (!%p82_p12)
}
  0x1e   :  { %s86_s24 = scalar_lea.hbm %s139_s1, 128 }
  0x1f   :  { %p87_p13 = scmp.ne.s32.totalorder %s139_s1, %s86_s24  ;;  %p90_p0 = scmp.lt.u32.totalorder %s86_s24, %s139_s1 }
  0x21   :  { %p92_p1 = pnand %p90_p0, %p87_p13 }
  0x23   :  { %95 = shalt.err (!%p92_p1)
}
  0x24   :  { %42 = dma.vmem_to_hbm [thread:$0]  %s40_s21, 128, %s139_s1, [#allocation4]  }
  0x25   :  { %98 = dma.done.wait [#allocation4], 128  }
  0x26   :  { %99 = vsyncadd [#allocation4], 4294967168 }
  0x27   :  { %46 = vsyncpa [#allocation3], 1 }
  0x28   :  { %47 = vsyncpa [#allocation4], 1 }

</bundles_post_ra>
